<compile_context>
chip_gen: v6e
topology: v6e:2x2x1
jax: 0.10.0
libtpu: 0.0.40
codegen_flags: <defaults>
</compile_context>

<pallas_src>
import functools
import math

import jax
import jax.numpy as jnp
from jax.experimental import pallas as pl
from jax.experimental.pallas import tpu as pltpu


# ------------------------------ Pallas kernel -------------------------------

def _encoder_layer_kernel(x_ref, wqkv_ref, bqkv_ref, wo_ref, bo_ref,
                          g1_ref, b1_ref, w1_ref, bf1_ref, w2_ref, bf2_ref,
                          g2_ref, b2_ref, o_ref, *, num_heads, eps):
    """Whole encoder layer for one batch element: MHA -> 2x(res+LN1) -> FFN -> res -> LN2."""
    x = x_ref[0]                                                  # (L, E)
    L, E = x.shape
    hd = E // num_heads

    # ---- fused QKV projection: one MXU pass, 3E-wide lane-dense result ----
    qkv = jnp.dot(x, wqkv_ref[...], preferred_element_type=jnp.float32) + bqkv_ref[...]
    q, k, v = qkv[:, :E], qkv[:, E:2 * E], qkv[:, 2 * E:]

    # ---- batched per-head attention (single 3D contraction per stage) ----
    # Heads are gathered once into a (H, L, hd) stack; scores and context are
    # each ONE batched einsum instead of H unrolled tiny matmuls.
    qh = jnp.stack([q[:, h * hd:(h + 1) * hd] for h in range(num_heads)], axis=0)
    kh = jnp.stack([k[:, h * hd:(h + 1) * hd] for h in range(num_heads)], axis=0)
    vh = jnp.stack([v[:, h * hd:(h + 1) * hd] for h in range(num_heads)], axis=0)

    s = jnp.einsum('hqd,hkd->hqk', qh, kh,
                   preferred_element_type=jnp.float32)            # (H, L, L)
    m = jnp.max(s, axis=-1, keepdims=True)
    p = jnp.exp(s - m)
    p = p / jnp.sum(p, axis=-1, keepdims=True)                    # exact softmax denom
    ctx = jnp.einsum('hqk,hkd->hqd', p, vh,
                     preferred_element_type=jnp.float32)          # (H, L, hd)

    # Lane-concatenate heads back to (L, E) and do ONE out-projection at
    # full-E contraction depth.
    ctx2d = jnp.concatenate([ctx[h] for h in range(num_heads)], axis=-1)   # (L, E)
    attn = jnp.dot(ctx2d, wo_ref[...], preferred_element_type=jnp.float32) + bo_ref[...]

    def layernorm(h, g, b):
        mu = jnp.mean(h, axis=-1, keepdims=True)
        c = h - mu
        var = jnp.mean(c * c, axis=-1, keepdims=True)
        return c * jax.lax.rsqrt(var + eps) * g + b

    # ---- residual + LayerNorm1, applied twice exactly as in the reference ----
    x1 = layernorm(x + attn, g1_ref[...], b1_ref[...])
    x2 = layernorm(x1 + attn, g1_ref[...], b1_ref[...])
    # (first feed_forward(x1) of the reference is dead code -> skipped)

    # ---- fused FFN: Linear -> ReLU -> Linear -> residual -> LayerNorm2 ----
    h1 = jnp.dot(x2, w1_ref[...], preferred_element_type=jnp.float32) + bf1_ref[...]
    h1 = jnp.maximum(h1, 0.0)
    ff = jnp.dot(h1, w2_ref[...], preferred_element_type=jnp.float32) + bf2_ref[...]
    x3 = layernorm(x2 + ff, g2_ref[...], b2_ref[...])

    o_ref[0] = x3.astype(o_ref.dtype)


# ------------------------------ kernel wrapper -------------------------------

def encoder_layer_forward(x, pp, num_heads, eps=1e-5):
    """x: (L, N, E) seq-first, as nn.MultiheadAttention(batch_first=False) expects."""
    L, N, E = x.shape
    F = pp["w1"].shape[1]

    # One-time layout change to batch-major so every block is a legal,
    # lane-dense (L, E) slab (last two block dims == full array dims).
    xb = jnp.transpose(x, (1, 0, 2))                              # (N, L, E)

    kern = functools.partial(_encoder_layer_kernel, num_heads=num_heads, eps=eps)
    full = lambda n: (0, 0)   # weights / biases resident across the whole grid

    out_b = pl.pallas_call(
        kern,
        out_shape=jax.ShapeDtypeStruct((N, L, E), x.dtype),
        grid=(N,),
        in_specs=[
            pl.BlockSpec((1, L, E), lambda n: (n, 0, 0)),         # x (per batch element)
            pl.BlockSpec((E, 3 * E), full), pl.BlockSpec((1, 3 * E), full),   # Wqkv, bqkv
            pl.BlockSpec((E, E), full), pl.BlockSpec((1, E), full),           # Wo, bo
            pl.BlockSpec((1, E), full), pl.BlockSpec((1, E), full),           # LN1 gamma, beta
            pl.BlockSpec((E, F), full), pl.BlockSpec((1, F), full),           # W1, b1
            pl.BlockSpec((F, E), full), pl.BlockSpec((1, E), full),           # W2, b2
            pl.BlockSpec((1, E), full), pl.BlockSpec((1, E), full),           # LN2 gamma, beta
        ],
        out_specs=pl.BlockSpec((1, L, E), lambda n: (n, 0, 0)),
        compiler_params=pltpu.CompilerParams(
            dimension_semantics=("parallel",),       # grid=(N,)>=2 -> both v7x TCs
            vmem_limit_bytes=32 * 1024 * 1024,       # explicit budget (tiny usage here)
        ),
    )(xb, pp["wqkv"], pp["bqkv"], pp["wo"], pp["bo"], pp["g1"], pp["b1"],
      pp["w1"], pp["bf1"], pp["w2"], pp["bf2"], pp["g2"], pp["b2"])

    return jnp.transpose(out_b, (1, 0, 2))                        # back to (L, N, E)


# --------------------------------- parameters --------------------------------

def init_params(key, d_model, num_heads, d_ff):
    """PyTorch-layout raw parameters for EncoderLayer."""
    ks = jax.random.split(key, 6)

    def n(k, shape, s=0.05):
        return jax.random.normal(k, shape, jnp.float32) * s

    return {
        "in_proj_w": n(ks[0], (3 * d_model, d_model)),
        "in_proj_b": n(ks[1], (3 * d_model,), 0.02),
        "out_proj_w": n(ks[2], (d_model, d_model)),
        "out_proj_b": n(ks[3], (d_model,), 0.02),
        "ff1_w": n(ks[4], (d_ff, d_model)),
        "ff1_b": jnp.zeros((d_ff,), jnp.float32),
        "ff2_w": n(ks[5], (d_model, d_ff)),
        "ff2_b": jnp.zeros((d_model,), jnp.float32),
        "ln1_g": jnp.ones((d_model,), jnp.float32),
        "ln1_b": jnp.zeros((d_model,), jnp.float32),
        "ln2_g": jnp.ones((d_model,), jnp.float32),
        "ln2_b": jnp.zeros((d_model,), jnp.float32),
    }


def prep_params(raw, num_heads):
    """One-time prep: pre-transpose weights, fuse Wq|Wk|Wv, fold 1/sqrt(hd) into Wq/bq."""
    E = raw["ln1_g"].shape[0]
    hd = E // num_heads
    scale = 1.0 / math.sqrt(hd)

    wq = jnp.transpose(raw["in_proj_w"][0:E]) * scale             # (E, E), scaled
    wk = jnp.transpose(raw["in_proj_w"][E:2 * E])
    wv = jnp.transpose(raw["in_proj_w"][2 * E:3 * E])
    bq = raw["in_proj_b"][0:E] * scale
    bk = raw["in_proj_b"][E:2 * E]
    bv = raw["in_proj_b"][2 * E:3 * E]

    return {
        "wqkv": jnp.concatenate([wq, wk, wv], axis=1),            # (E, 3E)
        "bqkv": jnp.concatenate([bq, bk, bv]).reshape(1, 3 * E),  # (1, 3E)
        "wo": jnp.transpose(raw["out_proj_w"]),                   # (E, E)
        "bo": raw["out_proj_b"].reshape(1, E),
        "w1": jnp.transpose(raw["ff1_w"]),                        # (E, F)
        "bf1": raw["ff1_b"].reshape(1, -1),
        "w2": jnp.transpose(raw["ff2_w"]),                        # (F, E)
        "bf2": raw["ff2_b"].reshape(1, E),
        "g1": raw["ln1_g"].reshape(1, E), "b1": raw["ln1_b"].reshape(1, E),
        "g2": raw["ln2_g"].reshape(1, E), "b2": raw["ln2_b"].reshape(1, E),
    }


# ------------------------------------ main ------------------------------------

if __name__ == "__main__":
    d_model, num_heads, d_ff = 32, 4, 64
    seq, batch = 8, 2          # x is (L=seq, N=batch, E=d_model), seq-first MHA layout

    key = jax.random.PRNGKey(0)
    pkey, xkey = jax.random.split(key)
    raw_params = init_params(pkey, d_model, num_heads, d_ff)
    pp = prep_params(raw_params, num_heads)
    x = jax.random.normal(xkey, (seq, batch, d_model), jnp.float32)

    fwd = jax.jit(functools.partial(encoder_layer_forward, num_heads=num_heads))
    out = jax.block_until_ready(fwd(x, pp))

    assert out.shape == (seq, batch, d_model)
    assert bool(jnp.all(jnp.isfinite(out)))
    print("KERNEL_OK")
</pallas_src>

<mosaic_0001>
module attributes {stable_mosaic.version = 11 : i64} {
  func.func @_encoder_layer_kernel(%arg0: i32, %arg1: memref<1x8x32xf32, #tpu.memory_space<vmem>>, %arg2: memref<32x96xf32, #tpu.memory_space<vmem>>, %arg3: memref<1x96xf32, #tpu.memory_space<vmem>>, %arg4: memref<32x32xf32, #tpu.memory_space<vmem>>, %arg5: memref<1x32xf32, #tpu.memory_space<vmem>>, %arg6: memref<1x32xf32, #tpu.memory_space<vmem>>, %arg7: memref<1x32xf32, #tpu.memory_space<vmem>>, %arg8: memref<32x64xf32, #tpu.memory_space<vmem>>, %arg9: memref<1x64xf32, #tpu.memory_space<vmem>>, %arg10: memref<64x32xf32, #tpu.memory_space<vmem>>, %arg11: memref<1x32xf32, #tpu.memory_space<vmem>>, %arg12: memref<1x32xf32, #tpu.memory_space<vmem>>, %arg13: memref<1x32xf32, #tpu.memory_space<vmem>>, %arg14: memref<1x8x32xf32, #tpu.memory_space<vmem>>) attributes {dimension_semantics = [#tpu.dimension_semantics<parallel>], iteration_bounds = array<i64: 2>, scalar_prefetch = 0 : i64, scratch_operands = 0 : i64, tpu.core_type = #tpu.core_type<tc>, window_params = [{transform_indices = @transform_0, window_bounds = array<i64: 1, 8, 32>}, {pipeline_mode = #tpu.pipeline_mode<synchronous>, transform_indices = @transform_1, window_bounds = array<i64: 32, 96>}, {pipeline_mode = #tpu.pipeline_mode<synchronous>, transform_indices = @transform_2, window_bounds = array<i64: 1, 96>}, {pipeline_mode = #tpu.pipeline_mode<synchronous>, transform_indices = @transform_3, window_bounds = array<i64: 32, 32>}, {pipeline_mode = #tpu.pipeline_mode<synchronous>, transform_indices = @transform_4, window_bounds = array<i64: 1, 32>}, {pipeline_mode = #tpu.pipeline_mode<synchronous>, transform_indices = @transform_5, window_bounds = array<i64: 1, 32>}, {pipeline_mode = #tpu.pipeline_mode<synchronous>, transform_indices = @transform_6, window_bounds = array<i64: 1, 32>}, {pipeline_mode = #tpu.pipeline_mode<synchronous>, transform_indices = @transform_7, window_bounds = array<i64: 32, 64>}, {pipeline_mode = #tpu.pipeline_mode<synchronous>, transform_indices = @transform_8, window_bounds = array<i64: 1, 64>}, {pipeline_mode = #tpu.pipeline_mode<synchronous>, transform_indices = @transform_9, window_bounds = array<i64: 64, 32>}, {pipeline_mode = #tpu.pipeline_mode<synchronous>, transform_indices = @transform_10, window_bounds = array<i64: 1, 32>}, {pipeline_mode = #tpu.pipeline_mode<synchronous>, transform_indices = @transform_11, window_bounds = array<i64: 1, 32>}, {pipeline_mode = #tpu.pipeline_mode<synchronous>, transform_indices = @transform_12, window_bounds = array<i64: 1, 32>}, {transform_indices = @transform_13, window_bounds = array<i64: 1, 8, 32>}]} {
    %c0 = arith.constant 0 : index
    %c0_0 = arith.constant 0 : index
    %c0_1 = arith.constant 0 : index
    %0 = vector.load %arg1[%c0, %c0_0, %c0_1] : memref<1x8x32xf32, #tpu.memory_space<vmem>>, vector<1x8x32xf32>
    %1 = vector.shape_cast %0 : vector<1x8x32xf32> to vector<8x32xf32>
    %c0_2 = arith.constant 0 : index
    %c0_3 = arith.constant 0 : index
    %2 = vector.load %arg2[%c0_2, %c0_3] : memref<32x96xf32, #tpu.memory_space<vmem>>, vector<32x96xf32>
    %cst = arith.constant dense<0.000000e+00> : vector<8x96xf32>
    %3 = tpu.matmul %1, %2, %cst {dimension_numbers = #tpu.dot_dimension_numbers<[1], [0], [0], [1], [0, 0, 1, 1], [], []>} : vector<8x32xf32>, vector<32x96xf32>, vector<8x96xf32> -> vector<8x96xf32>
    %c0_4 = arith.constant 0 : index
    %c0_5 = arith.constant 0 : index
    %4 = vector.load %arg3[%c0_4, %c0_5] : memref<1x96xf32, #tpu.memory_space<vmem>>, vector<1x96xf32>
    %5 = vector.broadcast %4 : vector<1x96xf32> to vector<8x96xf32>
    %6 = arith.addf %3, %5 : vector<8x96xf32>
    %7 = vector.extract_strided_slice %6 {offsets = [0, 0], sizes = [8, 32], strides = [1, 1]} : vector<8x96xf32> to vector<8x32xf32>
    %8 = vector.extract_strided_slice %6 {offsets = [0, 32], sizes = [8, 32], strides = [1, 1]} : vector<8x96xf32> to vector<8x32xf32>
    %9 = vector.extract_strided_slice %6 {offsets = [0, 64], sizes = [8, 32], strides = [1, 1]} : vector<8x96xf32> to vector<8x32xf32>
    %10 = vector.extract_strided_slice %7 {offsets = [0, 0], sizes = [8, 8], strides = [1, 1]} : vector<8x32xf32> to vector<8x8xf32>
    %11 = vector.extract_strided_slice %7 {offsets = [0, 8], sizes = [8, 8], strides = [1, 1]} : vector<8x32xf32> to vector<8x8xf32>
    %12 = vector.extract_strided_slice %7 {offsets = [0, 16], sizes = [8, 8], strides = [1, 1]} : vector<8x32xf32> to vector<8x8xf32>
    %13 = vector.extract_strided_slice %7 {offsets = [0, 24], sizes = [8, 8], strides = [1, 1]} : vector<8x32xf32> to vector<8x8xf32>
    %14 = vector.shape_cast %10 : vector<8x8xf32> to vector<1x8x8xf32>
    %15 = vector.shape_cast %11 : vector<8x8xf32> to vector<1x8x8xf32>
    %16 = vector.shape_cast %12 : vector<8x8xf32> to vector<1x8x8xf32>
    %17 = vector.shape_cast %13 : vector<8x8xf32> to vector<1x8x8xf32>
    %18 = tpu.concatenate %14, %15, %16, %17 in 0 : vector<1x8x8xf32>, vector<1x8x8xf32>, vector<1x8x8xf32>, vector<1x8x8xf32> -> vector<4x8x8xf32>
    %19 = vector.extract_strided_slice %8 {offsets = [0, 0], sizes = [8, 8], strides = [1, 1]} : vector<8x32xf32> to vector<8x8xf32>
    %20 = vector.extract_strided_slice %8 {offsets = [0, 8], sizes = [8, 8], strides = [1, 1]} : vector<8x32xf32> to vector<8x8xf32>
    %21 = vector.extract_strided_slice %8 {offsets = [0, 16], sizes = [8, 8], strides = [1, 1]} : vector<8x32xf32> to vector<8x8xf32>
    %22 = vector.extract_strided_slice %8 {offsets = [0, 24], sizes = [8, 8], strides = [1, 1]} : vector<8x32xf32> to vector<8x8xf32>
    %23 = vector.shape_cast %19 : vector<8x8xf32> to vector<1x8x8xf32>
    %24 = vector.shape_cast %20 : vector<8x8xf32> to vector<1x8x8xf32>
    %25 = vector.shape_cast %21 : vector<8x8xf32> to vector<1x8x8xf32>
    %26 = vector.shape_cast %22 : vector<8x8xf32> to vector<1x8x8xf32>
    %27 = tpu.concatenate %23, %24, %25, %26 in 0 : vector<1x8x8xf32>, vector<1x8x8xf32>, vector<1x8x8xf32>, vector<1x8x8xf32> -> vector<4x8x8xf32>
    %28 = vector.extract_strided_slice %9 {offsets = [0, 0], sizes = [8, 8], strides = [1, 1]} : vector<8x32xf32> to vector<8x8xf32>
    %29 = vector.extract_strided_slice %9 {offsets = [0, 8], sizes = [8, 8], strides = [1, 1]} : vector<8x32xf32> to vector<8x8xf32>
    %30 = vector.extract_strided_slice %9 {offsets = [0, 16], sizes = [8, 8], strides = [1, 1]} : vector<8x32xf32> to vector<8x8xf32>
    %31 = vector.extract_strided_slice %9 {offsets = [0, 24], sizes = [8, 8], strides = [1, 1]} : vector<8x32xf32> to vector<8x8xf32>
    %32 = vector.shape_cast %28 : vector<8x8xf32> to vector<1x8x8xf32>
    %33 = vector.shape_cast %29 : vector<8x8xf32> to vector<1x8x8xf32>
    %34 = vector.shape_cast %30 : vector<8x8xf32> to vector<1x8x8xf32>
    %35 = vector.shape_cast %31 : vector<8x8xf32> to vector<1x8x8xf32>
    %36 = tpu.concatenate %32, %33, %34, %35 in 0 : vector<1x8x8xf32>, vector<1x8x8xf32>, vector<1x8x8xf32>, vector<1x8x8xf32> -> vector<4x8x8xf32>
    "tpu.trace_start"() <{level = 10 : i32, message = "hqd,hkd->hqk"}> : () -> ()
    %cst_6 = arith.constant dense<0.000000e+00> : vector<4x8x8xf32>
    %37 = tpu.matmul %18, %27, %cst_6 {dimension_numbers = #tpu.dot_dimension_numbers<[2], [2], [1], [1], [0, 0, 0, 1, 1, 1], [0], [0]>} : vector<4x8x8xf32>, vector<4x8x8xf32>, vector<4x8x8xf32> -> vector<4x8x8xf32>
    "tpu.trace_stop"() : () -> ()
    %cst_7 = arith.constant dense<0xFF800000> : vector<4x8xf32>
    %38 = vector.multi_reduction <maximumf>, %37, %cst_7 [2] : vector<4x8x8xf32> to vector<4x8xf32>
    %39 = vector.shape_cast %38 : vector<4x8xf32> to vector<4x8x1xf32>
    %40 = vector.broadcast %39 : vector<4x8x1xf32> to vector<4x8x8xf32>
    %41 = arith.subf %37, %40 : vector<4x8x8xf32>
    %42 = math.exp %41 : vector<4x8x8xf32>
    %cst_8 = arith.constant dense<0.000000e+00> : vector<4x8xf32>
    %43 = vector.multi_reduction <add>, %42, %cst_8 [2] : vector<4x8x8xf32> to vector<4x8xf32>
    %44 = vector.shape_cast %43 : vector<4x8xf32> to vector<4x8x1xf32>
    %45 = vector.broadcast %44 : vector<4x8x1xf32> to vector<4x8x8xf32>
    %46 = arith.divf %42, %45 : vector<4x8x8xf32>
    "tpu.trace_start"() <{level = 10 : i32, message = "hqk,hkd->hqd"}> : () -> ()
    %cst_9 = arith.constant dense<0.000000e+00> : vector<4x8x8xf32>
    %47 = tpu.matmul %46, %36, %cst_9 {dimension_numbers = #tpu.dot_dimension_numbers<[2], [1], [1], [2], [0, 0, 0, 1, 1, 2], [0], [0]>} : vector<4x8x8xf32>, vector<4x8x8xf32>, vector<4x8x8xf32> -> vector<4x8x8xf32>
    "tpu.trace_stop"() : () -> ()
    %48 = vector.extract_strided_slice %47 {offsets = [0, 0, 0], sizes = [1, 8, 8], strides = [1, 1, 1]} : vector<4x8x8xf32> to vector<1x8x8xf32>
    %49 = vector.shape_cast %48 : vector<1x8x8xf32> to vector<8x8xf32>
    %50 = vector.extract_strided_slice %47 {offsets = [1, 0, 0], sizes = [1, 8, 8], strides = [1, 1, 1]} : vector<4x8x8xf32> to vector<1x8x8xf32>
    %51 = vector.shape_cast %50 : vector<1x8x8xf32> to vector<8x8xf32>
    %52 = vector.extract_strided_slice %47 {offsets = [2, 0, 0], sizes = [1, 8, 8], strides = [1, 1, 1]} : vector<4x8x8xf32> to vector<1x8x8xf32>
    %53 = vector.shape_cast %52 : vector<1x8x8xf32> to vector<8x8xf32>
    %54 = vector.extract_strided_slice %47 {offsets = [3, 0, 0], sizes = [1, 8, 8], strides = [1, 1, 1]} : vector<4x8x8xf32> to vector<1x8x8xf32>
    %55 = vector.shape_cast %54 : vector<1x8x8xf32> to vector<8x8xf32>
    %56 = tpu.concatenate %49, %51, %53, %55 in 1 : vector<8x8xf32>, vector<8x8xf32>, vector<8x8xf32>, vector<8x8xf32> -> vector<8x32xf32>
    %c0_10 = arith.constant 0 : index
    %c0_11 = arith.constant 0 : index
    %57 = vector.load %arg4[%c0_10, %c0_11] : memref<32x32xf32, #tpu.memory_space<vmem>>, vector<32x32xf32>
    %cst_12 = arith.constant dense<0.000000e+00> : vector<8x32xf32>
    %58 = tpu.matmul %56, %57, %cst_12 {dimension_numbers = #tpu.dot_dimension_numbers<[1], [0], [0], [1], [0, 0, 1, 1], [], []>} : vector<8x32xf32>, vector<32x32xf32>, vector<8x32xf32> -> vector<8x32xf32>
    %c0_13 = arith.constant 0 : index
    %c0_14 = arith.constant 0 : index
    %59 = vector.load %arg5[%c0_13, %c0_14] : memref<1x32xf32, #tpu.memory_space<vmem>>, vector<1x32xf32>
    %60 = vector.broadcast %59 : vector<1x32xf32> to vector<8x32xf32>
    %61 = arith.addf %58, %60 : vector<8x32xf32>
    %62 = arith.addf %1, %61 : vector<8x32xf32>
    %c0_15 = arith.constant 0 : index
    %c0_16 = arith.constant 0 : index
    %63 = vector.load %arg6[%c0_15, %c0_16] : memref<1x32xf32, #tpu.memory_space<vmem>>, vector<1x32xf32>
    %c0_17 = arith.constant 0 : index
    %c0_18 = arith.constant 0 : index
    %64 = vector.load %arg7[%c0_17, %c0_18] : memref<1x32xf32, #tpu.memory_space<vmem>>, vector<1x32xf32>
    %cst_19 = arith.constant dense<0.000000e+00> : vector<8xf32>
    %65 = vector.multi_reduction <add>, %62, %cst_19 [1] : vector<8x32xf32> to vector<8xf32>
    %66 = vector.shape_cast %65 : vector<8xf32> to vector<8x1xf32>
    %cst_20 = arith.constant 3.200000e+01 : f32
    %67 = vector.broadcast %cst_20 : f32 to vector<8x1xf32>
    %68 = arith.divf %66, %67 : vector<8x1xf32>
    %69 = vector.broadcast %68 : vector<8x1xf32> to vector<8x32xf32>
    %70 = arith.subf %62, %69 : vector<8x32xf32>
    %71 = arith.mulf %70, %70 : vector<8x32xf32>
    %cst_21 = arith.constant dense<0.000000e+00> : vector<8xf32>
    %72 = vector.multi_reduction <add>, %71, %cst_21 [1] : vector<8x32xf32> to vector<8xf32>
    %73 = vector.shape_cast %72 : vector<8xf32> to vector<8x1xf32>
    %cst_22 = arith.constant 3.200000e+01 : f32
    %74 = vector.broadcast %cst_22 : f32 to vector<8x1xf32>
    %75 = arith.divf %73, %74 : vector<8x1xf32>
    %cst_23 = arith.constant 9.99999974E-6 : f32
    %76 = vector.broadcast %cst_23 : f32 to vector<8x1xf32>
    %77 = arith.addf %75, %76 : vector<8x1xf32>
    %78 = math.rsqrt %77 : vector<8x1xf32>
    %79 = vector.broadcast %78 : vector<8x1xf32> to vector<8x32xf32>
    %80 = arith.mulf %70, %79 : vector<8x32xf32>
    %81 = vector.broadcast %63 : vector<1x32xf32> to vector<8x32xf32>
    %82 = arith.mulf %80, %81 : vector<8x32xf32>
    %83 = vector.broadcast %64 : vector<1x32xf32> to vector<8x32xf32>
    %84 = arith.addf %82, %83 : vector<8x32xf32>
    %85 = arith.addf %84, %61 : vector<8x32xf32>
    %c0_24 = arith.constant 0 : index
    %c0_25 = arith.constant 0 : index
    %86 = vector.load %arg6[%c0_24, %c0_25] : memref<1x32xf32, #tpu.memory_space<vmem>>, vector<1x32xf32>
    %c0_26 = arith.constant 0 : index
    %c0_27 = arith.constant 0 : index
    %87 = vector.load %arg7[%c0_26, %c0_27] : memref<1x32xf32, #tpu.memory_space<vmem>>, vector<1x32xf32>
    %cst_28 = arith.constant dense<0.000000e+00> : vector<8xf32>
    %88 = vector.multi_reduction <add>, %85, %cst_28 [1] : vector<8x32xf32> to vector<8xf32>
    %89 = vector.shape_cast %88 : vector<8xf32> to vector<8x1xf32>
    %cst_29 = arith.constant 3.200000e+01 : f32
    %90 = vector.broadcast %cst_29 : f32 to vector<8x1xf32>
    %91 = arith.divf %89, %90 : vector<8x1xf32>
    %92 = vector.broadcast %91 : vector<8x1xf32> to vector<8x32xf32>
    %93 = arith.subf %85, %92 : vector<8x32xf32>
    %94 = arith.mulf %93, %93 : vector<8x32xf32>
    %cst_30 = arith.constant dense<0.000000e+00> : vector<8xf32>
    %95 = vector.multi_reduction <add>, %94, %cst_30 [1] : vector<8x32xf32> to vector<8xf32>
    %96 = vector.shape_cast %95 : vector<8xf32> to vector<8x1xf32>
    %cst_31 = arith.constant 3.200000e+01 : f32
    %97 = vector.broadcast %cst_31 : f32 to vector<8x1xf32>
    %98 = arith.divf %96, %97 : vector<8x1xf32>
    %cst_32 = arith.constant 9.99999974E-6 : f32
    %99 = vector.broadcast %cst_32 : f32 to vector<8x1xf32>
    %100 = arith.addf %98, %99 : vector<8x1xf32>
    %101 = math.rsqrt %100 : vector<8x1xf32>
    %102 = vector.broadcast %101 : vector<8x1xf32> to vector<8x32xf32>
    %103 = arith.mulf %93, %102 : vector<8x32xf32>
    %104 = vector.broadcast %86 : vector<1x32xf32> to vector<8x32xf32>
    %105 = arith.mulf %103, %104 : vector<8x32xf32>
    %106 = vector.broadcast %87 : vector<1x32xf32> to vector<8x32xf32>
    %107 = arith.addf %105, %106 : vector<8x32xf32>
    %c0_33 = arith.constant 0 : index
    %c0_34 = arith.constant 0 : index
    %108 = vector.load %arg8[%c0_33, %c0_34] : memref<32x64xf32, #tpu.memory_space<vmem>>, vector<32x64xf32>
    %cst_35 = arith.constant dense<0.000000e+00> : vector<8x64xf32>
    %109 = tpu.matmul %107, %108, %cst_35 {dimension_numbers = #tpu.dot_dimension_numbers<[1], [0], [0], [1], [0, 0, 1, 1], [], []>} : vector<8x32xf32>, vector<32x64xf32>, vector<8x64xf32> -> vector<8x64xf32>
    %c0_36 = arith.constant 0 : index
    %c0_37 = arith.constant 0 : index
    %110 = vector.load %arg9[%c0_36, %c0_37] : memref<1x64xf32, #tpu.memory_space<vmem>>, vector<1x64xf32>
    %111 = vector.broadcast %110 : vector<1x64xf32> to vector<8x64xf32>
    %112 = arith.addf %109, %111 : vector<8x64xf32>
    %cst_38 = arith.constant 0.000000e+00 : f32
    %113 = vector.broadcast %cst_38 : f32 to vector<8x64xf32>
    %114 = arith.maximumf %112, %113 : vector<8x64xf32>
    %c0_39 = arith.constant 0 : index
    %c0_40 = arith.constant 0 : index
    %115 = vector.load %arg10[%c0_39, %c0_40] : memref<64x32xf32, #tpu.memory_space<vmem>>, vector<64x32xf32>
    %cst_41 = arith.constant dense<0.000000e+00> : vector<8x32xf32>
    %116 = tpu.matmul %114, %115, %cst_41 {dimension_numbers = #tpu.dot_dimension_numbers<[1], [0], [0], [1], [0, 0, 1, 1], [], []>} : vector<8x64xf32>, vector<64x32xf32>, vector<8x32xf32> -> vector<8x32xf32>
    %c0_42 = arith.constant 0 : index
    %c0_43 = arith.constant 0 : index
    %117 = vector.load %arg11[%c0_42, %c0_43] : memref<1x32xf32, #tpu.memory_space<vmem>>, vector<1x32xf32>
    %118 = vector.broadcast %117 : vector<1x32xf32> to vector<8x32xf32>
    %119 = arith.addf %116, %118 : vector<8x32xf32>
    %120 = arith.addf %107, %119 : vector<8x32xf32>
    %c0_44 = arith.constant 0 : index
    %c0_45 = arith.constant 0 : index
    %121 = vector.load %arg12[%c0_44, %c0_45] : memref<1x32xf32, #tpu.memory_space<vmem>>, vector<1x32xf32>
    %c0_46 = arith.constant 0 : index
    %c0_47 = arith.constant 0 : index
    %122 = vector.load %arg13[%c0_46, %c0_47] : memref<1x32xf32, #tpu.memory_space<vmem>>, vector<1x32xf32>
    %cst_48 = arith.constant dense<0.000000e+00> : vector<8xf32>
    %123 = vector.multi_reduction <add>, %120, %cst_48 [1] : vector<8x32xf32> to vector<8xf32>
    %124 = vector.shape_cast %123 : vector<8xf32> to vector<8x1xf32>
    %cst_49 = arith.constant 3.200000e+01 : f32
    %125 = vector.broadcast %cst_49 : f32 to vector<8x1xf32>
    %126 = arith.divf %124, %125 : vector<8x1xf32>
    %127 = vector.broadcast %126 : vector<8x1xf32> to vector<8x32xf32>
    %128 = arith.subf %120, %127 : vector<8x32xf32>
    %129 = arith.mulf %128, %128 : vector<8x32xf32>
    %cst_50 = arith.constant dense<0.000000e+00> : vector<8xf32>
    %130 = vector.multi_reduction <add>, %129, %cst_50 [1] : vector<8x32xf32> to vector<8xf32>
    %131 = vector.shape_cast %130 : vector<8xf32> to vector<8x1xf32>
    %cst_51 = arith.constant 3.200000e+01 : f32
    %132 = vector.broadcast %cst_51 : f32 to vector<8x1xf32>
    %133 = arith.divf %131, %132 : vector<8x1xf32>
    %cst_52 = arith.constant 9.99999974E-6 : f32
    %134 = vector.broadcast %cst_52 : f32 to vector<8x1xf32>
    %135 = arith.addf %133, %134 : vector<8x1xf32>
    %136 = math.rsqrt %135 : vector<8x1xf32>
    %137 = vector.broadcast %136 : vector<8x1xf32> to vector<8x32xf32>
    %138 = arith.mulf %128, %137 : vector<8x32xf32>
    %139 = vector.broadcast %121 : vector<1x32xf32> to vector<8x32xf32>
    %140 = arith.mulf %138, %139 : vector<8x32xf32>
    %141 = vector.broadcast %122 : vector<1x32xf32> to vector<8x32xf32>
    %142 = arith.addf %140, %141 : vector<8x32xf32>
    %c0_53 = arith.constant 0 : index
    %c0_54 = arith.constant 0 : index
    %c0_55 = arith.constant 0 : index
    %143 = vector.load %arg14[%c0_53, %c0_54, %c0_55] : memref<1x8x32xf32, #tpu.memory_space<vmem>>, vector<1x8x32xf32>
    %144 = vector.shape_cast %143 : vector<1x8x32xf32> to vector<8x32xf32>
    %145 = vector.shape_cast %142 : vector<8x32xf32> to vector<1x8x32xf32>
    tpu.vector_store %arg14[%c0_53, %c0_54, %c0_55], %145 {strides = array<i32>} : memref<1x8x32xf32, #tpu.memory_space<vmem>>, vector<1x8x32xf32>,
    return
  }
  func.func @transform_0(%arg0: i32) -> (i32, i32, i32) {
    %c0_i32 = arith.constant 0 : i32
    %c0_i32_0 = arith.constant 0 : i32
    %c0_i32_1 = arith.constant 0 : i32
    return %arg0, %c0_i32, %c0_i32_0 : i32, i32, i32
  }
  func.func @transform_1(%arg0: i32) -> (i32, i32) {
    %c0_i32 = arith.constant 0 : i32
    %c0_i32_0 = arith.constant 0 : i32
    %c0_i32_1 = arith.constant 0 : i32
    return %c0_i32, %c0_i32_0 : i32, i32
  }
  func.func @transform_2(%arg0: i32) -> (i32, i32) {
    %c0_i32 = arith.constant 0 : i32
    %c0_i32_0 = arith.constant 0 : i32
    %c0_i32_1 = arith.constant 0 : i32
    return %c0_i32, %c0_i32_0 : i32, i32
  }
  func.func @transform_3(%arg0: i32) -> (i32, i32) {
    %c0_i32 = arith.constant 0 : i32
    %c0_i32_0 = arith.constant 0 : i32
    %c0_i32_1 = arith.constant 0 : i32
    return %c0_i32, %c0_i32_0 : i32, i32
  }
  func.func @transform_4(%arg0: i32) -> (i32, i32) {
    %c0_i32 = arith.constant 0 : i32
    %c0_i32_0 = arith.constant 0 : i32
    %c0_i32_1 = arith.constant 0 : i32
    return %c0_i32, %c0_i32_0 : i32, i32
  }
  func.func @transform_5(%arg0: i32) -> (i32, i32) {
    %c0_i32 = arith.constant 0 : i32
    %c0_i32_0 = arith.constant 0 : i32
    %c0_i32_1 = arith.constant 0 : i32
    return %c0_i32, %c0_i32_0 : i32, i32
  }
  func.func @transform_6(%arg0: i32) -> (i32, i32) {
    %c0_i32 = arith.constant 0 : i32
    %c0_i32_0 = arith.constant 0 : i32
    %c0_i32_1 = arith.constant 0 : i32
    return %c0_i32, %c0_i32_0 : i32, i32
  }
  func.func @transform_7(%arg0: i32) -> (i32, i32) {
    %c0_i32 = arith.constant 0 : i32
    %c0_i32_0 = arith.constant 0 : i32
    %c0_i32_1 = arith.constant 0 : i32
    return %c0_i32, %c0_i32_0 : i32, i32
  }
  func.func @transform_8(%arg0: i32) -> (i32, i32) {
    %c0_i32 = arith.constant 0 : i32
    %c0_i32_0 = arith.constant 0 : i32
    %c0_i32_1 = arith.constant 0 : i32
    return %c0_i32, %c0_i32_0 : i32, i32
  }
  func.func @transform_9(%arg0: i32) -> (i32, i32) {
    %c0_i32 = arith.constant 0 : i32
    %c0_i32_0 = arith.constant 0 : i32
    %c0_i32_1 = arith.constant 0 : i32
    return %c0_i32, %c0_i32_0 : i32, i32
  }
  func.func @transform_10(%arg0: i32) -> (i32, i32) {
    %c0_i32 = arith.constant 0 : i32
    %c0_i32_0 = arith.constant 0 : i32
    %c0_i32_1 = arith.constant 0 : i32
    return %c0_i32, %c0_i32_0 : i32, i32
  }
  func.func @transform_11(%arg0: i32) -> (i32, i32) {
    %c0_i32 = arith.constant 0 : i32
    %c0_i32_0 = arith.constant 0 : i32
    %c0_i32_1 = arith.constant 0 : i32
    return %c0_i32, %c0_i32_0 : i32, i32
  }
  func.func @transform_12(%arg0: i32) -> (i32, i32) {
    %c0_i32 = arith.constant 0 : i32
    %c0_i32_0 = arith.constant 0 : i32
    %c0_i32_1 = arith.constant 0 : i32
    return %c0_i32, %c0_i32_0 : i32, i32
  }
  func.func @transform_13(%arg0: i32) -> (i32, i32, i32) {
    %c0_i32 = arith.constant 0 : i32
    %c0_i32_0 = arith.constant 0 : i32
    %c0_i32_1 = arith.constant 0 : i32
    return %arg0, %c0_i32, %c0_i32_0 : i32, i32, i32
  }
}

</mosaic_0001>

<bundles_post_ra>
// kernel: encoder_layer_forward.1
= control target key start
LH: loop header
LB: loop body
LE: loop exit
PB: predicated region body
PF: predicated region fallthrough
CT: control target
= control target key end

     0   :  { %s1881_s25 = smov 0   ;;  %s2090_s0 = inlined_call_operand.vmem [shape: f32[2,8,32], index: 0, kind: input, shape index: {}]   ;;  %s2091_s1 = inlined_call_operand.vmem [shape: f32[32,96], index: 1, kind: input, shape index: {}]   ;;  %s2092_s2 = inlined_call_operand.vmem [shape: f32[1,96], index: 2, kind: input, shape index: {}]   ;;  %s2093_s3 = inlined_call_operand.vmem [shape: f32[32,32], index: 3, kind: input, shape index: {}]   ;;  %s2094_s4 = inlined_call_operand.vmem [shape: f32[1,32], index: 4, kind: input, shape index: {}]   ;;  %s2095_s5 = inlined_call_operand.vmem [shape: f32[1,32], index: 5, kind: input, shape index: {}]   ;;  %s2096_s6 = inlined_call_operand.vmem [shape: f32[1,32], index: 6, kind: input, shape index: {}]   ;;  %s2097_s7 = inlined_call_operand.vmem [shape: f32[32,64], index: 7, kind: input, shape index: {}]   ;;  %s2098_s8 = inlined_call_operand.vmem [shape: f32[1,64], index: 8, kind: input, shape index: {}]   ;;  %s2099_s9 = inlined_call_operand.vmem [shape: f32[64,32], index: 9, kind: input, shape index: {}]   ;;  %s2100_s10 = inlined_call_operand.vmem [shape: f32[1,32], index: 10, kind: input, shape index: {}]   ;;  %s2101_s11 = inlined_call_operand.vmem [shape: f32[1,32], index: 11, kind: input, shape index: {}]   ;;  %s2102_s12 = inlined_call_operand.vmem [shape: f32[1,32], index: 12, kind: input, shape index: {}]   ;;  %s2103_s13 = inlined_call_operand.vmem [shape: f32[2,8,32], index: 13, kind: output, shape index: {}]  }
   0x1 LB: > { %s1588_s26 = sadd.s32 4294967295, %s1799_s25   ;;  %p1592_p0 = scmp.ge.s32.totalorder %s1799_s25, 1  ;;  %s1799_s25 = sphi %s1881_s25, %s23_s25  }
   0x2   : > { %p386_p1 = scmp.lt.s32.totalorder %s1799_s25, 3 }
   0x4   : > { %p387_p2 = pnand %p1592_p0, %p386_p1 }
   0x5   : > { %p428_p3 = scmp.lt.s32.totalorder (!%p387_p2), %s1588_s26, 1  ;;  %s1803_s24 = smov (!%p387_p2), 104  }
   0x6   : > { %390 = sbr.rel (%p387_p2) target bundleno = 2786 (0xae2), region = 72  ;;  %s1804_s27 = smov (!%p387_p2), 120  }
   0x7   : > { %s1805_s28 = smov (!%p387_p2), 96   ;;  %s1806_s29 = smov (!%p387_p2), 112  }
   0x8   : > { %s1807_s30 = smov (!%p387_p2), 64   ;;  %s1808_s23 = smov (!%p387_p2), 8  }
   0xb   : > { %v440_v0 = vld [vmem:[%s2091_s1 + $0x18] sm:$0xff]  ;;  %v1801_v1 = vmov 0.0   ;;  %v439_v2 = vld [vmem:[%s2091_s1 + $0x10] sm:$0xff]  ;;  %vm1802_vm0 = vmmov 0   ;;  %s2105_s26 = smov (!%p428_p3, %s1588_s26), 1  ;;  %v438_v3 = vld [vmem:[%s2091_s1 + $0x8] sm:$0xff] }
   0xc   : > { %1661 = vmatprep.subr.mxu1 %v1801_v1  ;;  %1669 = vmatprep.mubr.msk.f32.mxu1 %vm1802_vm0, %v1801_v1  ;;  %s1593_s16 = sshll.u32 %s2105_s26, 3  ;;  %v437_v4 = vld [vmem:[%s2091_s1] sm:$0xff]  ;;  %vm448_vm1 = vcmask 261120   ;;  %vm531_vm2 = vcmask 64512   ;;  %vm1195_vm3 = vcmask 130048   ;;  %vm1197_vm4 = vcmask 195584  }
   0xd   : > { %1662 = vmatpush3.msra.mxu1 %v440_v0  ;;  %1682 = vmatprep.subr.mxu0 %v1801_v1  ;;  %s431_s21 = scalar_lea.vmem %s2090_s0, %s1593_s16  ;;  %v1595_v6 = vld [vmem:[%s2092_s2] ss:$0 sm:$0xff]  ;;  %vm1430_vm5 = vcmask 523264  }
   0xe   : > { %1663 = vmatprep.subr.mxu1 %v1801_v1  ;;  %1684 = vmatprep.mubr.msk.f32.mxu0 %vm1802_vm0, %v1801_v1  ;;  %v1917_v5 = vld [vmem:[%s431_s21] sm:$0xff] }
   0xf   : > { %1664 = vmatpush3.msra.mxu1 %v439_v2  ;;  %v1202_v2 = vld [vmem:[%s2093_s3 + $0x18] sm:$0xff] }
  0x10   : > { %1665 = vmatprep.subr.mxu1 %v1801_v1 }
  0x11   : > { %1666 = vmatpush3.msra.mxu1 %v438_v3 }
  0x12   : > { %1667 = vmatprep.subr.mxu1 %v1801_v1 }
  0x13   : > { %1668 = vmatpush3.msra.mxu1 %v437_v4 }
  0x14   : > { %1670 = vmatmul.mubr.msk.f32.vlgmr.msra.gmra.mxu1 %vm448_vm1, %v1917_v5  ;;  %1672 = vmatprep.subr.mxu1 %v1801_v1 }
  0x15   : > { %1674 = vmatprep.mubr.msk.f32.mxu1 %vm1802_vm0, %v1801_v1 }
  0xd4   : > { %v518_v7 = vpop.f32.mrf.mxu1 }
  0xd5   : > { %v519_v8 = vadd.f32 %v1595_v6, %v518_v7  ;;  %v1201_v6 = vld [vmem:[%s2093_s3 + $0x10] sm:$0xff]  ;;  %v1200_v7 = vld [vmem:[%s2093_s3 + $0x8] sm:$0xff] }
  0xd6   : > { %v1671_v9 = vpop.f32.mrf.mxu1 }
  0xd7   : > { %527 = vrot.lane.b32.xlu1 %v519_v8, %s1803_s24  ;;  %523 = vrot.lane.b32.xlu0 %v519_v8, %s1804_s27  ;;  %s1809_s24 = smov 24   ;;  %s1810_s27 = smov 16  }
  0xdb   : > { %529 = vrot.lane.b32.xlu1 %v519_v8, %s1805_s28  ;;  %525 = vrot.lane.b32.xlu0 %v519_v8, %s1806_s29 }
 0x149   : > { %v1928_v10 = vpop.permute.xlu1 %527  ;;  %v524_v11 = vpop.permute.xlu0 %523 }
 0x14a   : > { %606 = vrot.lane.b32.xlu0 %v524_v11, %s1805_s28 }
 0x14d   : > { %v530_v12 = vpop.permute.xlu1 %529  ;;  %v1930_v13 = vpop.permute.xlu0 %525 }
 0x14e   : > { %1673 = vmatpush3.xpose.msk.msra.mxu1 %vm531_vm2, %v530_v12  ;;  %758 = vrot.lane.b32.xlu0 %v1928_v10, %s1805_s28 }
 0x14f   : > { %682 = vrot.lane.b32.xlu1 %v1930_v13, %s1805_s28  ;;  %1677 = vmatprep.subr.mxu1 %v1801_v1 }
 0x151   : > { %1675 = vmatmul.mubr.msk.f32.vlgmr.msra.gmra.mxu1 %vm531_vm2, %v519_v8 }
 0x152   : > { %1679 = vmatprep.mubr.msk.f32.mxu1 %vm1802_vm0, %v1801_v1 }
 0x1bc   : > { %v607_v14 = vpop.permute.xlu0 %606 }
 0x1bd   : > { %1678 = vmatpush3.xpose.msk.msra.mxu1 %vm531_vm2, %v607_v14 }
 0x1be   : > { %1687 = vmatprep.subr.mxu1 %v1801_v1 }
 0x1c0   : > { %1680 = vmatmul.mubr.msk.f32.vlgmr.msra.gmra.mxu1 %vm531_vm2, %v524_v11  ;;  %v759_v15 = vpop.permute.xlu0 %758 }
 0x1c1   : > { %v683_v16 = vpop.permute.xlu1 %682  ;;  %1688 = vmatpush3.xpose.msk.msra.mxu1 %vm531_vm2, %v759_v15  ;;  %1689 = vmatprep.mubr.msk.f32.mxu1 %vm1802_vm0, %v1801_v1 }
 0x1c2   : > { %1683 = vmatpush3.xpose.msk.msra.mxu0 %vm531_vm2, %v683_v16  ;;  %1697 = vmatprep.subr.mxu1 %v1801_v1 }
 0x1c3   : > { %1692 = vmatprep.subr.mxu0 %v1801_v1 }
 0x1c4   : > { %1690 = vmatmul.mubr.msk.f32.vlgmr.msra.gmra.mxu1 %vm531_vm2, %v1928_v10 }
 0x1c5   : > { %1685 = vmatmul.mubr.msk.f32.vlgmr.msra.gmra.mxu0 %vm531_vm2, %v1930_v13  ;;  %1699 = vmatprep.mubr.msk.f32.mxu1 %vm1802_vm0, %v1801_v1 }
 0x1c6   : > { %1694 = vmatprep.mubr.msk.f32.mxu0 %vm1802_vm0, %v1801_v1 }
 0x211   : > { %v602_v17 = vpop.f32.mrf.mxu1 }
 0x212   : > { %v834_v18 = vsel %vm531_vm2, %v602_v17, -inf }
 0x213   : > { %835 = vmax.xlane.f32.xlu1 %v834_v18  ;;  %v1676_v19 = vpop.f32.mrf.mxu1 }
 0x280   : > { %v678_v20 = vpop.f32.mrf.mxu1 }
 0x281   : > { %v837_v21 = vsel %vm531_vm2, %v678_v20, -inf }
 0x282   : > { %838 = vmax.xlane.f32.xlu0 %v837_v21  ;;  %v1681_v22 = vpop.f32.mrf.mxu1  ;;  %v1609_v21 = vld [vmem:[%s2094_s4] ss:$0 sm:$0xff] }
 0x284   : > { %v830_v23 = vpop.f32.mrf.mxu1 }
 0x285   : > { %v754_v24 = vpop.f32.mrf.mxu0  ;;  %v843_v25 = vsel %vm531_vm2, %v830_v23, -inf }
 0x286   : > { %v840_v26 = vsel %vm531_vm2, %v754_v24, -inf  ;;  %844 = vmax.xlane.f32.xlu1 %v843_v25  ;;  %v1691_v27 = vpop.f32.mrf.mxu1 }
 0x287   : > { %v1686_v28 = vpop.f32.mrf.mxu0  ;;  %841 = vmax.xlane.f32.xlu0 %v840_v26 }
 0x297   : > { %954 = vrot.lane.b32.xlu1 %v524_v11, %s1807_s30 }
 0x29c   : > { %v836_v29 = vpop.xlane.xlu1 %835 }
 0x29d   : > { %878 = vrot.lane.b32.xlu0 %v519_v8, %s1807_s30  ;;  %v846_v30 = vsub.f32 %v602_v17, %v836_v29  ;;  %v1199_v8 = vld [vmem:[%s2093_s3] sm:$0xff] }
 0x29f   : > { %v850_v31 = vmul.f32 1.442695, %v846_v30 }
 0x2a1   : > { %1771 = vpow2.f32 %v850_v31 }
 0x2ae   : > { %v1772_v32 = vpop.eup %1771 }
 0x2af   : > { %v858_v33 = vsel %vm531_vm2, %v1772_v32, 0.0 }
 0x2bc   : > { %859 = vadd.xlane.f32.xlu0 %v858_v33 }
 0x30b   : > { %v839_v34 = vpop.xlane.xlu0 %838 }
 0x30c   : > { %v847_v35 = vsub.f32 %v678_v20, %v839_v34 }
 0x30e   : > { %v852_v36 = vmul.f32 1.442695, %v847_v35 }
 0x30f   : > { %v845_v37 = vpop.xlane.xlu1 %844 }
 0x310   : > { %1773 = vpow2.f32 %v852_v36  ;;  %v842_v38 = vpop.xlane.xlu0 %841  ;;  %v849_v39 = vsub.f32 %v830_v23, %v845_v37  ;;  %v1611_v36 = vld [vmem:[%s2095_s5] ss:$0 sm:$0xff] }
 0x311   : > { %v848_v40 = vsub.f32 %v754_v24, %v842_v38  ;;  %v1612_v37 = vld [vmem:[%s2096_s6] ss:$0 sm:$0xff] }
 0x312   : > { %v856_v41 = vmul.f32 1.442695, %v849_v39 }
 0x313   : > { %v854_v42 = vmul.f32 1.442695, %v848_v40  ;;  %v955_v43 = vpop.permute.xlu1 %954 }
 0x314   : > { %1775 = vpow2.f32 %v856_v41  ;;  %v879_v44 = vpop.permute.xlu0 %878  ;;  %1698 = vmatpush3.msra.mxu1 %v955_v43 }
 0x315   : > { %1777 = vpow2.f32 %v854_v42  ;;  %1693 = vmatpush3.msra.mxu0 %v879_v44  ;;  %1707 = vmatprep.subr.mxu1 %v1801_v1 }
 0x316   : > { %1702 = vmatprep.subr.mxu0 %v1801_v1 }
 0x31d   : > { %v1774_v45 = vpop.eup %1773 }
 0x31e   : > { %v861_v46 = vsel %vm531_vm2, %v1774_v45, 0.0 }
 0x31f   : > { %862 = vadd.xlane.f32.xlu1 %v861_v46 }
 0x321   : > { %v1776_v47 = vpop.eup %1775 }
 0x322   : > { %v1778_v48 = vpop.eup %1777  ;;  %v867_v49 = vsel %vm531_vm2, %v1776_v47, 0.0 }
 0x323   : > { %v864_v50 = vsel %vm531_vm2, %v1778_v48, 0.0  ;;  %868 = vadd.xlane.f32.xlu1 %v867_v49  ;;  %v1331_v49 = vld [vmem:[%s2097_s7 + $0x8] sm:$0xff] }
 0x324   : > { %865 = vadd.xlane.f32.xlu0 %v864_v50  ;;  %v1330_v50 = vld [vmem:[%s2097_s7] sm:$0xff] }
 0x334   : > { %1030 = vrot.lane.b32.xlu1 %v1930_v13, %s1807_s30 }
 0x33a   : > { %1106 = vrot.lane.b32.xlu0 %v1928_v10, %s1807_s30 }
 0x345   : > { %v860_v51 = vpop.xlane.xlu0 %859 }
 0x346   : > { %1779 = vrcp.f32 %v860_v51  ;;  %v1422_v51 = vld [vmem:[%s2099_s9 + $0x38] sm:$0xff] }
 0x353   : > { %v1780_v52 = vpop.eup %1779 }
 0x354   : > { %v871_v53 = vmul.f32 %v1780_v52, %v1772_v32  ;;  %v1421_v52 = vld [vmem:[%s2099_s9 + $0x30] sm:$0xff] }
 0x356   : > { %1695 = vmatmul.mubr.msk.f32.vlgmr.msra.gmra.mxu0 %vm531_vm2, %v871_v53  ;;  %v1420_v53 = vld [vmem:[%s2099_s9 + $0x28] sm:$0xff] }
 0x357   : > { %1704 = vmatprep.mubr.msk.f32.mxu0 %vm1802_vm0, %v1801_v1 }
 0x3a8   : > { %v863_v54 = vpop.xlane.xlu1 %862 }
 0x3a9   : > { %1781 = vrcp.f32 %v863_v54  ;;  %v1419_v54 = vld [vmem:[%s2099_s9 + $0x20] sm:$0xff] }
 0x3ac   : > { %v869_v55 = vpop.xlane.xlu1 %868 }
 0x3ad   : > { %v866_v56 = vpop.xlane.xlu0 %865  ;;  %1783 = vrcp.f32 %v869_v55  ;;  %v1418_v55 = vld [vmem:[%s2099_s9 + $0x18] sm:$0xff] }
 0x3ae   : > { %1785 = vrcp.f32 %v866_v56 }
 0x3b0   : > { %v1031_v57 = vpop.permute.xlu1 %1030 }
 0x3b1   : > { %1703 = vmatpush3.msra.mxu0 %v1031_v57  ;;  %v1107_v60 = vpop.permute.xlu0 %1106 }
 0x3b2   : > { %1712 = vmatprep.subr.mxu0 %v1801_v1 }
 0x3b6   : > { %v1782_v58 = vpop.eup %1781 }
 0x3b7   : > { %v873_v59 = vmul.f32 %v1782_v58, %v1774_v45 }
 0x3b9   : > { %1700 = vmatmul.mubr.msk.f32.vlgmr.msra.gmra.mxu1 %vm531_vm2, %v873_v59 }
 0x3ba   : > { %v1784_v61 = vpop.eup %1783  ;;  %1708 = vmatpush3.msra.mxu1 %v1107_v60  ;;  %1709 = vmatprep.mubr.msk.f32.mxu1 %vm1802_vm0, %v1801_v1 }
 0x3bb   : > { %v1786_v62 = vpop.eup %1785  ;;  %v877_v63 = vmul.f32 %v1784_v61, %v1776_v47  ;;  %1723 = vmatprep.subr.mxu1 %v1801_v1  ;;  %v1333_v47 = vld [vmem:[%s2097_s7 + $0x18] sm:$0xff] }
 0x3bc   : > { %v875_v0 = vmul.f32 %v1786_v62, %v1778_v48  ;;  %v1332_v48 = vld [vmem:[%s2097_s7 + $0x10] sm:$0xff] }
 0x3bd   : > { %1710 = vmatmul.mubr.msk.f32.vlgmr.msra.gmra.mxu1 %vm531_vm2, %v877_v63  ;;  %v1417_v63 = vld [vmem:[%s2099_s9 + $0x10] sm:$0xff] }
 0x3be   : > { %1705 = vmatmul.mubr.msk.f32.vlgmr.msra.gmra.mxu0 %vm531_vm2, %v875_v0  ;;  %1731 = vmatprep.mubr.msk.f32.mxu1 %vm1802_vm0, %v1801_v1  ;;  %v1416_v0 = vld [vmem:[%s2099_s9 + $0x8] sm:$0xff] }
 0x3bf   : > { %1720 = vmatprep.mubr.msk.f32.mxu0 %vm1802_vm0, %v1801_v1  ;;  %1713 = vmatpush3.msra.mxu0 %v1202_v2  ;;  %v1415_v2 = vld [vmem:[%s2099_s9] sm:$0xff] }
 0x3c0   : > { %1714 = vmatprep.subr.mxu0 %v1801_v1  ;;  %1724 = vmatpush3.msra.mxu1 %v1333_v47 }
 0x3c1   : > { %1715 = vmatpush3.msra.mxu0 %v1201_v6  ;;  %1725 = vmatprep.subr.mxu1 %v1801_v1 }
 0x3c2   : > { %1716 = vmatprep.subr.mxu0 %v1801_v1  ;;  %1726 = vmatpush3.msra.mxu1 %v1332_v48 }
 0x3c3   : > { %1717 = vmatpush3.msra.mxu0 %v1200_v7  ;;  %1727 = vmatprep.subr.mxu1 %v1801_v1 }
 0x3c4   : > { %1718 = vmatprep.subr.mxu0 %v1801_v1  ;;  %1728 = vmatpush3.msra.mxu1 %v1331_v49 }
 0x3c5   : > { %1719 = vmatpush3.msra.mxu0 %v1199_v8  ;;  %1729 = vmatprep.subr.mxu1 %v1801_v1 }
 0x3c6   : > { %1734 = vmatprep.subr.mxu0 %v1801_v1  ;;  %1730 = vmatpush3.msra.mxu1 %v1330_v50 }
 0x416   : > { %v950_v3 = vpop.f32.mrf.mxu0 }
 0x418   : > { %v1696_v4 = vpop.f32.mrf.mxu0 }
 0x479   : > { %v1026_v9 = vpop.f32.mrf.mxu1 }
 0x47a   : > { %1183 = vrot.lane.b32.xlu1 %v1026_v9, %s1808_s23  ;;  %v1615_v9 = vld [vmem:[%s2100_s10] ss:$0 sm:$0xff] }
 0x47b   : > { %v1701_v10 = vpop.f32.mrf.mxu1 }
 0x47d   : > { %v1178_v11 = vpop.f32.mrf.mxu1 }
 0x47e   : > { %v1102_v12 = vpop.f32.mrf.mxu0  ;;  %1191 = vrot.lane.b32.xlu1 %v1178_v11, %s1809_s24  ;;  %s435_s24 = scalar_lea.vmem %s2103_s13, %s1593_s16 }
 0x47f   : > { %1187 = vrot.lane.b32.xlu0 %v1102_v12, %s1810_s27  ;;  %v1711_v13 = vpop.f32.mrf.mxu1 }
 0x480   : > { %v1706_v14 = vpop.f32.mrf.mxu0 }
 0x4ec   : > { %v1184_v15 = vpop.permute.xlu1 %1183 }
 0x4ed   : > { %v1194_v17 = vsel %vm531_vm2, %v950_v3, %v1184_v15  ;;  %v1613_v3 = vld [vmem:[%s2098_s8] ss:$0 sm:$0xff] }
 0x4f0   : > { %v1192_v16 = vpop.permute.xlu1 %1191 }
 0x4f1   : > { %v1188_v18 = vpop.permute.xlu0 %1187 }
 0x4f2   : > { %v1196_v19 = vsel %vm1195_vm3, %v1194_v17, %v1188_v18 }
 0x4f3   : > { %v1198_v20 = vsel %vm1197_vm4, %v1196_v19, %v1192_v16 }
 0x4f4   : > { %1721 = vmatmul.mubr.msk.f32.vlgmr.msra.gmra.mxu0 %vm448_vm1, %v1198_v20 }
 0x4f5   : > { %1750 = vmatprep.mubr.msk.f32.mxu0 %vm1802_vm0, %v1801_v1  ;;  %1735 = vmatpush3.msra.mxu0 %v1422_v51 }
 0x4f6   : > { %1736 = vmatprep.subr.mxu0 %v1801_v1 }
 0x4f7   : > { %1737 = vmatpush3.msra.mxu0 %v1421_v52 }
 0x4f8   : > { %1738 = vmatprep.subr.mxu0 %v1801_v1 }
 0x4f9   : > { %1739 = vmatpush3.msra.mxu0 %v1420_v53 }
 0x4fa   : > { %1740 = vmatprep.subr.mxu0 %v1801_v1 }
 0x4fb   : > { %1741 = vmatpush3.msra.mxu0 %v1419_v54 }
 0x4fc   : > { %1742 = vmatprep.subr.mxu0 %v1801_v1 }
 0x4fd   : > { %1743 = vmatpush3.msra.mxu0 %v1418_v55 }
 0x4fe   : > { %1744 = vmatprep.subr.mxu0 %v1801_v1 }
 0x4ff   : > { %1745 = vmatpush3.msra.mxu0 %v1417_v63 }
 0x500   : > { %1746 = vmatprep.subr.mxu0 %v1801_v1 }
 0x501   : > { %1747 = vmatpush3.msra.mxu0 %v1416_v0 }
 0x502   : > { %1748 = vmatprep.subr.mxu0 %v1801_v1 }
 0x503   : > { %1749 = vmatpush3.msra.mxu0 %v1415_v2 }
 0x5b4   : > { %v1279_v22 = vpop.f32.mrf.mxu0 }
 0x5b5   : > { %v1280_v23 = vadd.f32 %v1609_v21, %v1279_v22 }
 0x5b6   : > { %v1722_v24 = vpop.f32.mrf.mxu0 }
 0x5b7   : > { %v1283_v25 = vadd.f32 %v1280_v23, %v1917_v5 }
 0x5b9   : > { %v1286_v26 = vsel %vm448_vm1, %v1283_v25, 0.0 }
 0x5ba   : > { %1287 = vadd.xlane.f32.xlu0 %v1286_v26 }
 0x643   : > { %v1288_v27 = vpop.xlane.xlu0 %1287 }
 0x644   : > { %v1290_v28 = vmul.f32 0.03125, %v1288_v27 }
 0x646   : > { %v1291_v29 = vsub.f32 %v1283_v25, %v1290_v28  ;;  %v1618_v25 = vld [vmem:[%s2102_s12] ss:$0 sm:$0xff] }
 0x648   : > { %v1292_v30 = vmul.f32 %v1291_v29, %v1291_v29 }
 0x64a   : > { %v1293_v31 = vsel %vm448_vm1, %v1292_v30, 0.0 }
 0x64b   : > { %1294 = vadd.xlane.f32.xlu1 %v1293_v31 }
 0x6d4   : > { %v1295_v32 = vpop.xlane.xlu1 %1294 }
 0x6d5   : > { %v1296_v33 = vmul.f32 0.03125, %v1295_v32 }
 0x6d7   : > { %v1297_v34 = vadd.f32 1e-05, %v1296_v33 }
 0x6d9   : > { %1787 = vrsqrt.f32 %v1297_v34 }
 0x6e6   : > { %v1788_v35 = vpop.eup %1787 }
 0x6e7   : > { %v1299_v5 = vmul.f32 %v1788_v35, %v1291_v29 }
 0x6e9   : > { %v1306_v38 = vmul.f32 %v1611_v36, %v1299_v5 }
 0x6eb   : > { %v1313_v39 = vadd.f32 %v1612_v37, %v1306_v38 }
 0x6ed   : > { %v1314_v40 = vadd.f32 %v1313_v39, %v1280_v23  ;;  %v1617_v23 = vld [vmem:[%s2101_s11] ss:$0 sm:$0xff] }
 0x6ef   : > { %v1315_v41 = vsel %vm448_vm1, %v1314_v40, 0.0 }
 0x6f0   : > { %1316 = vadd.xlane.f32.xlu0 %v1315_v41 }
 0x779   : > { %v1317_v42 = vpop.xlane.xlu0 %1316 }
 0x77a   : > { %v1318_v43 = vmul.f32 0.03125, %v1317_v42 }
 0x77c   : > { %v1319_v44 = vsub.f32 %v1314_v40, %v1318_v43 }
 0x77e   : > { %v1320_v45 = vmul.f32 %v1319_v44, %v1319_v44 }
 0x780   : > { %v1321_v46 = vsel %vm448_vm1, %v1320_v45, 0.0 }
 0x781   : > { %1322 = vadd.xlane.f32.xlu0 %v1321_v46 }
 0x80a   : > { %v1323_v56 = vpop.xlane.xlu0 %1322 }
 0x80b   : > { %v1324_v57 = vmul.f32 0.03125, %v1323_v56 }
 0x80d   : > { %v1325_v58 = vadd.f32 1e-05, %v1324_v57 }
 0x80f   : > { %1789 = vrsqrt.f32 %v1325_v58 }
 0x81c   : > { %v1790_v59 = vpop.eup %1789 }
 0x81d   : > { %v1327_v60 = vmul.f32 %v1790_v59, %v1319_v44 }
 0x81f   : > { %v1328_v61 = vmul.f32 %v1611_v36, %v1327_v60 }
 0x821   : > { %v1329_v62 = vadd.f32 %v1612_v37, %v1328_v61 }
 0x823   : > { %1732 = vmatmul.mubr.msk.f32.vlgmr.msra.gmra.mxu1 %vm448_vm1, %v1329_v62 }
 0x8e3   : > { %v1410_v4 = vpop.f32.mrf.mxu1 }
 0x8e4   : > { %v1411_v6 = vadd.f32 %v1613_v3, %v1410_v4 }
 0x8e5   : > { %v1733_v7 = vpop.f32.mrf.mxu1 }
 0x8e6   : > { %v1414_v8 = vmax.f32 %v1411_v6, 0.0 }
 0x8e8   : > { %1751 = vmatmul.mubr.msk.f32.vlgmr.msra.gmra.mxu0 %vm1430_vm5, %v1414_v8 }
 0x9a8   : > { %v1500_v1 = vpop.f32.mrf.mxu0 }
 0x9a9   : > { %v1501_v10 = vadd.f32 %v1615_v9, %v1500_v1 }
 0x9aa   : > { %v1752_v11 = vpop.f32.mrf.mxu0 }
 0x9ab   : > { %v1504_v12 = vadd.f32 %v1501_v10, %v1329_v62 }
 0x9ad   : > { %v1507_v13 = vsel %vm448_vm1, %v1504_v12, 0.0 }
 0x9ae   : > { %1508 = vadd.xlane.f32.xlu1 %v1507_v13 }
 0xa37   : > { %v1509_v14 = vpop.xlane.xlu1 %1508 }
 0xa38   : > { %v1510_v15 = vmul.f32 0.03125, %v1509_v14 }
 0xa3a   : > { %v1511_v16 = vsub.f32 %v1504_v12, %v1510_v15 }
 0xa3c   : > { %v1512_v17 = vmul.f32 %v1511_v16, %v1511_v16 }
 0xa3e   : > { %v1513_v18 = vsel %vm448_vm1, %v1512_v17, 0.0 }
 0xa3f   : > { %1514 = vadd.xlane.f32.xlu0 %v1513_v18 }
 0xac8   : > { %v1515_v19 = vpop.xlane.xlu0 %1514 }
 0xac9   : > { %v1516_v20 = vmul.f32 0.03125, %v1515_v19 }
 0xacb   : > { %v1517_v21 = vadd.f32 1e-05, %v1516_v20 }
 0xacd   : > { %1791 = vrsqrt.f32 %v1517_v21 }
 0xada   : > { %v1792_v22 = vpop.eup %1791 }
 0xadb   : > { %v1519_v24 = vmul.f32 %v1792_v22, %v1511_v16 }
 0xadd   : > { %v1526_v26 = vmul.f32 %v1617_v23, %v1519_v24 }
 0xadf   : > { %v1533_v27 = vadd.f32 %v1618_v25, %v1526_v26 }
 0xae1   : > { %1534 = vst.msk [vmem:[%s435_s24] sm:$0xff] %vm448_vm1, %v1533_v27 }
 0xae2 PF: > { %s23_s25 = sadd.s32 1, %s1799_s25  }
 0xae3   : > { %p20_p4 = scmp.ge.s32.totalorder %s23_s25, 4  }
 0xae5   :  { %22 = sbr.rel (!%p20_p4) target bundleno = 1 (0x1), region = 102 }

</bundles_post_ra>
